<compile_context>
chip_gen: v5e
topology: v5e:2x2
jax: 0.10.0
libtpu: 0.0.40
codegen_flags: <defaults>
</compile_context>

<pallas_src>
import functools

import jax
import jax.numpy as jnp
from jax.experimental import pallas as pl
from jax.experimental.pallas import tpu as pltpu


# ----------------------------- fused Pallas kernel -------------------------- #

def _fused_gcn_kernel(num_hidden, num_classes, *refs):
    """Entire forward: num_hidden hidden GCNLayers (+proj/tanh) + final GCNLayer
    with masked, lane-dense LogSoftmax output."""
    x_ref, a_ref = refs[0], refs[1]
    out_ref = refs[-1]
    prefs = refs[2:-1]

    bf16 = jnp.bfloat16
    a = a_ref[...]                     # (N, N) bf16 normalized adjacency
    h = x_ref[...]                     # (N, Din) f32 node features

    idx = 0
    for _ in range(num_hidden):
        wl, bl, wg, bg, wp, bp = [prefs[idx + j][...] for j in range(6)]
        idx += 6
        # Linear (BN folded in):  x @ W' + b'
        t = jnp.dot(h.astype(bf16), wl, preferred_element_type=jnp.float32) + bl
        # Dropout -> identity (inference); LeakyReLU(negative_slope=0.01)
        t = jnp.where(t >= 0, t, 0.01 * t)
        # GCNConv: A_norm @ (t @ W_gcn) + b_gcn
        hw = jnp.dot(t.astype(bf16), wg, preferred_element_type=jnp.float32)
        agg = jnp.dot(a, hw.astype(bf16), preferred_element_type=jnp.float32) + bg
        # fused layer-label projection + Tanh
        h = jnp.tanh(jnp.dot(agg.astype(bf16), wp,
                             preferred_element_type=jnp.float32) + bp)

    # Final GCNLayer (softmax=True); W_gcn/b_gcn are zero-padded to 128 classes.
    wl, bl, wg, bg = [prefs[idx + j][...] for j in range(4)]
    t = jnp.dot(h.astype(bf16), wl, preferred_element_type=jnp.float32) + bl
    t = jnp.where(t >= 0, t, 0.01 * t)
    hw = jnp.dot(t.astype(bf16), wg, preferred_element_type=jnp.float32)
    logits = jnp.dot(a, hw.astype(bf16), preferred_element_type=jnp.float32) + bg

    # LogSoftmax over the real classes only (pad lanes masked out).
    col = jax.lax.broadcasted_iota(jnp.int32, logits.shape, 1)
    valid = col < num_classes
    masked = jnp.where(valid, logits, -1e30)
    m = jnp.max(masked, axis=1, keepdims=True)
    z = masked - m
    ez = jnp.where(valid, jnp.exp(z), 0.0)
    lse = jnp.log(jnp.sum(ez, axis=1, keepdims=True))
    out_ref[...] = jnp.where(valid, z - lse, 0.0).astype(out_ref.dtype)


def _cpad(num_classes):
    return ((num_classes + 127) // 128) * 128


@functools.partial(jax.jit, static_argnames=("num_layers", "num_classes"))
def new_gcn_forward(x, a_norm_bf16, flat_params, num_layers, num_classes):
    n = x.shape[0]
    c_pad = _cpad(num_classes)
    args = (x, a_norm_bf16) + tuple(flat_params)
    vmem = pl.BlockSpec(memory_space=pltpu.MemorySpace.VMEM)
    kernel = functools.partial(_fused_gcn_kernel, num_layers - 1, num_classes)
    out = pl.pallas_call(
        kernel,
        out_shape=jax.ShapeDtypeStruct((n, c_pad), jnp.float32),
        in_specs=[vmem] * len(args),
        out_specs=vmem,
    )(*args)
    return out[:, :num_classes]


# ------------------------------ parameters ---------------------------------- #

def init_params(key, num_features, num_classes, hidden_size, num_layers):
    """Synthetic PyTorch-equivalent parameters (weights stored pre-transposed)."""
    params = []
    in_dim, out_dim = num_features, hidden_size
    eps = 1e-5
    for layer_idx in range(num_layers):
        final = layer_idx == num_layers - 1
        if final:
            out_dim = num_classes
        keys = jax.random.split(key, 11)
        key = keys[-1]

        # GCNLayer.linear : nn.Linear(in_dim, in_dim) -> store transposed (in,in)
        w_lin = 0.1 * jax.random.normal(keys[0], (in_dim, in_dim), jnp.float32)
        b_lin = 0.1 * jax.random.normal(keys[1], (1, in_dim), jnp.float32)
        # BatchNorm1d(in_dim), eval mode stats
        gamma = 1.0 + 0.1 * jax.random.normal(keys[2], (1, in_dim), jnp.float32)
        beta = 0.1 * jax.random.normal(keys[3], (1, in_dim), jnp.float32)
        running_mean = 0.1 * jax.random.normal(keys[4], (1, in_dim), jnp.float32)
        running_var = 1.0 + 0.5 * jax.random.uniform(keys[5], (1, in_dim), jnp.float32)
        bn_scale = gamma / jnp.sqrt(running_var + eps)
        bn_bias = beta - running_mean * bn_scale
        # GCNConv(in_dim, out_dim): store (in, out)
        w_gcn = 0.1 * jax.random.normal(keys[6], (in_dim, out_dim), jnp.float32)
        b_gcn = 0.1 * jax.random.normal(keys[7], (1, out_dim), jnp.float32)

        p = dict(w_lin=w_lin, b_lin=b_lin, bn_scale=bn_scale, bn_bias=bn_bias,
                 w_gcn=w_gcn, b_gcn=b_gcn)

        if not final:
            # proj: Linear(out_dim + num_layers, out_dim); one-hot layer label folded.
            w_proj_full = 0.1 * jax.random.normal(
                keys[8], (out_dim, out_dim + num_layers), jnp.float32)
            b_proj = 0.1 * jax.random.normal(keys[9], (1, out_dim), jnp.float32)
            w_proj_main = w_proj_full[:, :out_dim].T                   # (out, out)
            b_proj_eff = b_proj + w_proj_full[:, out_dim + layer_idx][None, :]
            p.update(w_proj=w_proj_main, b_proj=b_proj_eff)

        params.append(p)
        in_dim, out_dim = hidden_size, hidden_size
    return params


def prepare_kernel_params(params, num_classes):
    """Fold BN into linear, cast matmul weights to bf16, pad final class axis to 128."""
    c_pad = _cpad(num_classes)
    flat = []
    n_layers = len(params)
    for i, p in enumerate(params):
        final = i == n_layers - 1
        w_lin = (p["w_lin"] * p["bn_scale"]).astype(jnp.bfloat16)      # BN fold
        b_lin = p["b_lin"] * p["bn_scale"] + p["bn_bias"]
        w_gcn, b_gcn = p["w_gcn"], p["b_gcn"]
        if final:
            w_gcn = jnp.pad(w_gcn, ((0, 0), (0, c_pad - num_classes)))
            b_gcn = jnp.pad(b_gcn, ((0, 0), (0, c_pad - num_classes)))
        flat += [w_lin, b_lin, w_gcn.astype(jnp.bfloat16), b_gcn]
        if not final:
            flat += [p["w_proj"].astype(jnp.bfloat16), p["b_proj"]]
    return tuple(flat)


def normalize_adjacency(edges, weights, num_nodes):
    """Dense GCN normalization D^-1/2 (A + I) D^-1/2 (plain-JAX glue)."""
    a = jnp.zeros((num_nodes, num_nodes), jnp.float32)
    a = a.at[edges[0], edges[1]].add(weights)
    a = a + jnp.eye(num_nodes, dtype=jnp.float32)
    deg = jnp.sum(a, axis=1)
    dinv = jnp.where(deg > 0, 1.0 / jnp.sqrt(deg), 0.0)
    return a * dinv[:, None] * dinv[None, :]


# ------------------------------- reference ---------------------------------- #

def reference_forward(x, a_norm, params, num_layers):
    """Pure-JAX reference with the same bf16-operand / f32-accumulate matmuls."""
    bf16 = jnp.bfloat16
    a = a_norm.astype(bf16)
    h = x
    for i in range(num_layers):
        p = params[i]
        final = i == num_layers - 1
        wl = (p["w_lin"] * p["bn_scale"]).astype(bf16)
        bl = p["b_lin"] * p["bn_scale"] + p["bn_bias"]
        t = jnp.dot(h.astype(bf16), wl, preferred_element_type=jnp.float32) + bl
        t = jnp.where(t >= 0, t, 0.01 * t)
        hw = jnp.dot(t.astype(bf16), p["w_gcn"].astype(bf16),
                     preferred_element_type=jnp.float32)
        agg = jnp.dot(a, hw.astype(bf16), preferred_element_type=jnp.float32) + p["b_gcn"]
        if final:
            return jax.nn.log_softmax(agg, axis=1)
        h = jnp.tanh(jnp.dot(agg.astype(bf16), p["w_proj"].astype(bf16),
                             preferred_element_type=jnp.float32) + p["b_proj"])


# --------------------------------- main -------------------------------------- #

if __name__ == "__main__":
    NUM_NODES = 16
    NUM_FEATURES = 8
    NUM_CLASSES = 4
    HIDDEN = 32
    NUM_LAYERS = 3

    key = jax.random.PRNGKey(0)
    k_x, k_e, k_p = jax.random.split(key, 3)

    x = jax.random.normal(k_x, (NUM_NODES, NUM_FEATURES), jnp.float32)

    # Random undirected graph in COO form (mimics adj._indices()/._values()).
    mask = jax.random.bernoulli(k_e, 0.3, (NUM_NODES, NUM_NODES))
    mask = jnp.triu(mask, k=1)
    mask = mask | mask.T
    src, dst = jnp.nonzero(mask, size=NUM_NODES * NUM_NODES, fill_value=0)
    weights = mask[src, dst].astype(jnp.float32)       # 1.0 present, 0.0 padding
    edges = jnp.stack([src, dst])

    a_norm = normalize_adjacency(edges, weights, NUM_NODES)
    params = init_params(k_p, NUM_FEATURES, NUM_CLASSES, HIDDEN, NUM_LAYERS)
    flat_params = prepare_kernel_params(params, NUM_CLASSES)

    # TODO(synk): training-mode Dropout RNG and BatchNorm batch-stats are not
    # reproduced (inference-only semantics).
    out = new_gcn_forward(x, a_norm.astype(jnp.bfloat16), flat_params,
                          NUM_LAYERS, NUM_CLASSES)
    out = jax.block_until_ready(out)

    ref = reference_forward(x, a_norm, params, NUM_LAYERS)
    assert out.shape == (NUM_NODES, NUM_CLASSES)
    assert jnp.allclose(out, ref, atol=1e-3, rtol=1e-3), "mismatch vs JAX reference"

    print("KERNEL_OK")
</pallas_src>

<mosaic_0001>
module attributes {stable_mosaic.version = 11 : i64} {
  func.func @_fused_gcn_kernel(%arg0: memref<16x8xf32, #tpu.memory_space<vmem>>, %arg1: memref<16x16xbf16, #tpu.memory_space<vmem>>, %arg2: memref<8x8xbf16, #tpu.memory_space<vmem>>, %arg3: memref<1x8xf32, #tpu.memory_space<vmem>>, %arg4: memref<8x32xbf16, #tpu.memory_space<vmem>>, %arg5: memref<1x32xf32, #tpu.memory_space<vmem>>, %arg6: memref<32x32xbf16, #tpu.memory_space<vmem>>, %arg7: memref<1x32xf32, #tpu.memory_space<vmem>>, %arg8: memref<32x32xbf16, #tpu.memory_space<vmem>>, %arg9: memref<1x32xf32, #tpu.memory_space<vmem>>, %arg10: memref<32x32xbf16, #tpu.memory_space<vmem>>, %arg11: memref<1x32xf32, #tpu.memory_space<vmem>>, %arg12: memref<32x32xbf16, #tpu.memory_space<vmem>>, %arg13: memref<1x32xf32, #tpu.memory_space<vmem>>, %arg14: memref<32x32xbf16, #tpu.memory_space<vmem>>, %arg15: memref<1x32xf32, #tpu.memory_space<vmem>>, %arg16: memref<32x128xbf16, #tpu.memory_space<vmem>>, %arg17: memref<1x128xf32, #tpu.memory_space<vmem>>, %arg18: memref<16x128xf32, #tpu.memory_space<vmem>>) attributes {dimension_semantics = [], scalar_prefetch = 0 : i64, scratch_operands = 0 : i64, tpu.core_type = #tpu.core_type<tc>} {
    %c0 = arith.constant 0 : index
    %c0_0 = arith.constant 0 : index
    %0 = vector.load %arg1[%c0, %c0_0] : memref<16x16xbf16, #tpu.memory_space<vmem>>, vector<16x16xbf16>
    %c0_1 = arith.constant 0 : index
    %c0_2 = arith.constant 0 : index
    %1 = vector.load %arg0[%c0_1, %c0_2] : memref<16x8xf32, #tpu.memory_space<vmem>>, vector<16x8xf32>
    %c0_3 = arith.constant 0 : index
    %c0_4 = arith.constant 0 : index
    %2 = vector.load %arg2[%c0_3, %c0_4] : memref<8x8xbf16, #tpu.memory_space<vmem>>, vector<8x8xbf16>
    %c0_5 = arith.constant 0 : index
    %c0_6 = arith.constant 0 : index
    %3 = vector.load %arg3[%c0_5, %c0_6] : memref<1x8xf32, #tpu.memory_space<vmem>>, vector<1x8xf32>
    %c0_7 = arith.constant 0 : index
    %c0_8 = arith.constant 0 : index
    %4 = vector.load %arg4[%c0_7, %c0_8] : memref<8x32xbf16, #tpu.memory_space<vmem>>, vector<8x32xbf16>
    %c0_9 = arith.constant 0 : index
    %c0_10 = arith.constant 0 : index
    %5 = vector.load %arg5[%c0_9, %c0_10] : memref<1x32xf32, #tpu.memory_space<vmem>>, vector<1x32xf32>
    %c0_11 = arith.constant 0 : index
    %c0_12 = arith.constant 0 : index
    %6 = vector.load %arg6[%c0_11, %c0_12] : memref<32x32xbf16, #tpu.memory_space<vmem>>, vector<32x32xbf16>
    %c0_13 = arith.constant 0 : index
    %c0_14 = arith.constant 0 : index
    %7 = vector.load %arg7[%c0_13, %c0_14] : memref<1x32xf32, #tpu.memory_space<vmem>>, vector<1x32xf32>
    %8 = arith.truncf %1 : vector<16x8xf32> to vector<16x8xbf16>
    %cst = arith.constant dense<0.000000e+00> : vector<16x8xf32>
    %9 = tpu.matmul %8, %2, %cst {dimension_numbers = #tpu.dot_dimension_numbers<[1], [0], [0], [1], [0, 0, 1, 1], [], []>} : vector<16x8xbf16>, vector<8x8xbf16>, vector<16x8xf32> -> vector<16x8xf32>
    %10 = vector.broadcast %3 : vector<1x8xf32> to vector<16x8xf32>
    %11 = arith.addf %9, %10 : vector<16x8xf32>
    %cst_15 = arith.constant 0.000000e+00 : f32
    %12 = vector.broadcast %cst_15 : f32 to vector<16x8xf32>
    %13 = arith.cmpf oge, %11, %12 : vector<16x8xf32>
    %cst_16 = arith.constant 0.00999999977 : f32
    %14 = vector.broadcast %cst_16 : f32 to vector<16x8xf32>
    %15 = arith.mulf %14, %11 : vector<16x8xf32>
    %16 = arith.select %13, %11, %15 : vector<16x8xi1>, vector<16x8xf32>
    %17 = arith.truncf %16 : vector<16x8xf32> to vector<16x8xbf16>
    %cst_17 = arith.constant dense<0.000000e+00> : vector<16x32xf32>
    %18 = tpu.matmul %17, %4, %cst_17 {dimension_numbers = #tpu.dot_dimension_numbers<[1], [0], [0], [1], [0, 0, 1, 1], [], []>} : vector<16x8xbf16>, vector<8x32xbf16>, vector<16x32xf32> -> vector<16x32xf32>
    %19 = arith.truncf %18 : vector<16x32xf32> to vector<16x32xbf16>
    %cst_18 = arith.constant dense<0.000000e+00> : vector<16x32xf32>
    %20 = tpu.matmul %0, %19, %cst_18 {dimension_numbers = #tpu.dot_dimension_numbers<[1], [0], [0], [1], [0, 0, 1, 1], [], []>} : vector<16x16xbf16>, vector<16x32xbf16>, vector<16x32xf32> -> vector<16x32xf32>
    %21 = vector.broadcast %5 : vector<1x32xf32> to vector<16x32xf32>
    %22 = arith.addf %20, %21 : vector<16x32xf32>
    %23 = arith.truncf %22 : vector<16x32xf32> to vector<16x32xbf16>
    %cst_19 = arith.constant dense<0.000000e+00> : vector<16x32xf32>
    %24 = tpu.matmul %23, %6, %cst_19 {dimension_numbers = #tpu.dot_dimension_numbers<[1], [0], [0], [1], [0, 0, 1, 1], [], []>} : vector<16x32xbf16>, vector<32x32xbf16>, vector<16x32xf32> -> vector<16x32xf32>
    %25 = vector.broadcast %7 : vector<1x32xf32> to vector<16x32xf32>
    %26 = arith.addf %24, %25 : vector<16x32xf32>
    %27 = math.tanh %26 : vector<16x32xf32>
    %c0_20 = arith.constant 0 : index
    %c0_21 = arith.constant 0 : index
    %28 = vector.load %arg8[%c0_20, %c0_21] : memref<32x32xbf16, #tpu.memory_space<vmem>>, vector<32x32xbf16>
    %c0_22 = arith.constant 0 : index
    %c0_23 = arith.constant 0 : index
    %29 = vector.load %arg9[%c0_22, %c0_23] : memref<1x32xf32, #tpu.memory_space<vmem>>, vector<1x32xf32>
    %c0_24 = arith.constant 0 : index
    %c0_25 = arith.constant 0 : index
    %30 = vector.load %arg10[%c0_24, %c0_25] : memref<32x32xbf16, #tpu.memory_space<vmem>>, vector<32x32xbf16>
    %c0_26 = arith.constant 0 : index
    %c0_27 = arith.constant 0 : index
    %31 = vector.load %arg11[%c0_26, %c0_27] : memref<1x32xf32, #tpu.memory_space<vmem>>, vector<1x32xf32>
    %c0_28 = arith.constant 0 : index
    %c0_29 = arith.constant 0 : index
    %32 = vector.load %arg12[%c0_28, %c0_29] : memref<32x32xbf16, #tpu.memory_space<vmem>>, vector<32x32xbf16>
    %c0_30 = arith.constant 0 : index
    %c0_31 = arith.constant 0 : index
    %33 = vector.load %arg13[%c0_30, %c0_31] : memref<1x32xf32, #tpu.memory_space<vmem>>, vector<1x32xf32>
    %34 = arith.truncf %27 : vector<16x32xf32> to vector<16x32xbf16>
    %cst_32 = arith.constant dense<0.000000e+00> : vector<16x32xf32>
    %35 = tpu.matmul %34, %28, %cst_32 {dimension_numbers = #tpu.dot_dimension_numbers<[1], [0], [0], [1], [0, 0, 1, 1], [], []>} : vector<16x32xbf16>, vector<32x32xbf16>, vector<16x32xf32> -> vector<16x32xf32>
    %36 = vector.broadcast %29 : vector<1x32xf32> to vector<16x32xf32>
    %37 = arith.addf %35, %36 : vector<16x32xf32>
    %cst_33 = arith.constant 0.000000e+00 : f32
    %38 = vector.broadcast %cst_33 : f32 to vector<16x32xf32>
    %39 = arith.cmpf oge, %37, %38 : vector<16x32xf32>
    %cst_34 = arith.constant 0.00999999977 : f32
    %40 = vector.broadcast %cst_34 : f32 to vector<16x32xf32>
    %41 = arith.mulf %40, %37 : vector<16x32xf32>
    %42 = arith.select %39, %37, %41 : vector<16x32xi1>, vector<16x32xf32>
    %43 = arith.truncf %42 : vector<16x32xf32> to vector<16x32xbf16>
    %cst_35 = arith.constant dense<0.000000e+00> : vector<16x32xf32>
    %44 = tpu.matmul %43, %30, %cst_35 {dimension_numbers = #tpu.dot_dimension_numbers<[1], [0], [0], [1], [0, 0, 1, 1], [], []>} : vector<16x32xbf16>, vector<32x32xbf16>, vector<16x32xf32> -> vector<16x32xf32>
    %45 = arith.truncf %44 : vector<16x32xf32> to vector<16x32xbf16>
    %cst_36 = arith.constant dense<0.000000e+00> : vector<16x32xf32>
    %46 = tpu.matmul %0, %45, %cst_36 {dimension_numbers = #tpu.dot_dimension_numbers<[1], [0], [0], [1], [0, 0, 1, 1], [], []>} : vector<16x16xbf16>, vector<16x32xbf16>, vector<16x32xf32> -> vector<16x32xf32>
    %47 = vector.broadcast %31 : vector<1x32xf32> to vector<16x32xf32>
    %48 = arith.addf %46, %47 : vector<16x32xf32>
    %49 = arith.truncf %48 : vector<16x32xf32> to vector<16x32xbf16>
    %cst_37 = arith.constant dense<0.000000e+00> : vector<16x32xf32>
    %50 = tpu.matmul %49, %32, %cst_37 {dimension_numbers = #tpu.dot_dimension_numbers<[1], [0], [0], [1], [0, 0, 1, 1], [], []>} : vector<16x32xbf16>, vector<32x32xbf16>, vector<16x32xf32> -> vector<16x32xf32>
    %51 = vector.broadcast %33 : vector<1x32xf32> to vector<16x32xf32>
    %52 = arith.addf %50, %51 : vector<16x32xf32>
    %53 = math.tanh %52 : vector<16x32xf32>
    %c0_38 = arith.constant 0 : index
    %c0_39 = arith.constant 0 : index
    %54 = vector.load %arg14[%c0_38, %c0_39] : memref<32x32xbf16, #tpu.memory_space<vmem>>, vector<32x32xbf16>
    %c0_40 = arith.constant 0 : index
    %c0_41 = arith.constant 0 : index
    %55 = vector.load %arg15[%c0_40, %c0_41] : memref<1x32xf32, #tpu.memory_space<vmem>>, vector<1x32xf32>
    %c0_42 = arith.constant 0 : index
    %c0_43 = arith.constant 0 : index
    %56 = vector.load %arg16[%c0_42, %c0_43] : memref<32x128xbf16, #tpu.memory_space<vmem>>, vector<32x128xbf16>
    %c0_44 = arith.constant 0 : index
    %c0_45 = arith.constant 0 : index
    %57 = vector.load %arg17[%c0_44, %c0_45] : memref<1x128xf32, #tpu.memory_space<vmem>>, vector<1x128xf32>
    %58 = arith.truncf %53 : vector<16x32xf32> to vector<16x32xbf16>
    %cst_46 = arith.constant dense<0.000000e+00> : vector<16x32xf32>
    %59 = tpu.matmul %58, %54, %cst_46 {dimension_numbers = #tpu.dot_dimension_numbers<[1], [0], [0], [1], [0, 0, 1, 1], [], []>} : vector<16x32xbf16>, vector<32x32xbf16>, vector<16x32xf32> -> vector<16x32xf32>
    %60 = vector.broadcast %55 : vector<1x32xf32> to vector<16x32xf32>
    %61 = arith.addf %59, %60 : vector<16x32xf32>
    %cst_47 = arith.constant 0.000000e+00 : f32
    %62 = vector.broadcast %cst_47 : f32 to vector<16x32xf32>
    %63 = arith.cmpf oge, %61, %62 : vector<16x32xf32>
    %cst_48 = arith.constant 0.00999999977 : f32
    %64 = vector.broadcast %cst_48 : f32 to vector<16x32xf32>
    %65 = arith.mulf %64, %61 : vector<16x32xf32>
    %66 = arith.select %63, %61, %65 : vector<16x32xi1>, vector<16x32xf32>
    %67 = arith.truncf %66 : vector<16x32xf32> to vector<16x32xbf16>
    %cst_49 = arith.constant dense<0.000000e+00> : vector<16x128xf32>
    %68 = tpu.matmul %67, %56, %cst_49 {dimension_numbers = #tpu.dot_dimension_numbers<[1], [0], [0], [1], [0, 0, 1, 1], [], []>} : vector<16x32xbf16>, vector<32x128xbf16>, vector<16x128xf32> -> vector<16x128xf32>
    %69 = arith.truncf %68 : vector<16x128xf32> to vector<16x128xbf16>
    %cst_50 = arith.constant dense<0.000000e+00> : vector<16x128xf32>
    %70 = tpu.matmul %0, %69, %cst_50 {dimension_numbers = #tpu.dot_dimension_numbers<[1], [0], [0], [1], [0, 0, 1, 1], [], []>} : vector<16x16xbf16>, vector<16x128xbf16>, vector<16x128xf32> -> vector<16x128xf32>
    %71 = vector.broadcast %57 : vector<1x128xf32> to vector<16x128xf32>
    %72 = arith.addf %70, %71 : vector<16x128xf32>
    %73 = tpu.iota {dimensions = array<i32: 1>} : vector<16x128xi32>
    %c4_i32 = arith.constant 4 : i32
    %74 = vector.broadcast %c4_i32 : i32 to vector<16x128xi32>
    %75 = arith.cmpi slt, %73, %74 : vector<16x128xi32>
    %cst_51 = arith.constant -1.000000e+30 : f32
    %76 = vector.broadcast %cst_51 : f32 to vector<16x128xf32>
    %77 = arith.select %75, %72, %76 : vector<16x128xi1>, vector<16x128xf32>
    %cst_52 = arith.constant dense<0xFF800000> : vector<16xf32>
    %78 = vector.multi_reduction <maximumf>, %77, %cst_52 [1] : vector<16x128xf32> to vector<16xf32>
    %79 = vector.shape_cast %78 : vector<16xf32> to vector<16x1xf32>
    %80 = vector.broadcast %79 : vector<16x1xf32> to vector<16x128xf32>
    %81 = arith.subf %77, %80 : vector<16x128xf32>
    %82 = math.exp %81 : vector<16x128xf32>
    %cst_53 = arith.constant 0.000000e+00 : f32
    %83 = vector.broadcast %cst_53 : f32 to vector<16x128xf32>
    %84 = arith.select %75, %82, %83 : vector<16x128xi1>, vector<16x128xf32>
    %cst_54 = arith.constant dense<0.000000e+00> : vector<16xf32>
    %85 = vector.multi_reduction <add>, %84, %cst_54 [1] : vector<16x128xf32> to vector<16xf32>
    %86 = vector.shape_cast %85 : vector<16xf32> to vector<16x1xf32>
    %87 = math.log %86 : vector<16x1xf32>
    %88 = vector.broadcast %87 : vector<16x1xf32> to vector<16x128xf32>
    %89 = arith.subf %81, %88 : vector<16x128xf32>
    %cst_55 = arith.constant 0.000000e+00 : f32
    %90 = vector.broadcast %cst_55 : f32 to vector<16x128xf32>
    %91 = arith.select %75, %89, %90 : vector<16x128xi1>, vector<16x128xf32>
    %c0_56 = arith.constant 0 : index
    %c0_57 = arith.constant 0 : index
    %92 = vector.load %arg18[%c0_56, %c0_57] : memref<16x128xf32, #tpu.memory_space<vmem>>, vector<16x128xf32>
    tpu.vector_store %arg18[%c0_56, %c0_57], %91 {strides = array<i32>} : memref<16x128xf32, #tpu.memory_space<vmem>>, vector<16x128xf32>,
    return
  }
}

</mosaic_0001>

<bundles_post_ra>
// kernel: new_gcn_forward.1
= control target key start
LH: loop header
LB: loop body
LE: loop exit
PB: predicated region body
PF: predicated region fallthrough
CT: control target
= control target key end

     0   :  { %s1226_s0 = inlined_call_operand.vmem [shape: f32[16,8], index: 0, kind: input, shape index: {}]   ;;  %s1227_s1 = inlined_call_operand.hbm [shape: bf16[16,16], index: 1, kind: input, shape index: {}]   ;;  %s1228_s2 = inlined_call_operand.hbm [shape: bf16[8,8], index: 2, kind: input, shape index: {}]   ;;  %s1229_s3 = inlined_call_operand.hbm [shape: f32[1,8], index: 3, kind: input, shape index: {}]   ;;  %s1230_s4 = inlined_call_operand.hbm [shape: bf16[8,32], index: 4, kind: input, shape index: {}]   ;;  %s1231_s5 = inlined_call_operand.hbm [shape: f32[1,32], index: 5, kind: input, shape index: {}]   ;;  %s1232_s6 = inlined_call_operand.vmem [shape: bf16[32,32], index: 6, kind: input, shape index: {}]   ;;  %s1233_s7 = inlined_call_operand.hbm [shape: f32[1,32], index: 7, kind: input, shape index: {}]   ;;  %s1234_s8 = inlined_call_operand.hbm [shape: bf16[32,32], index: 8, kind: input, shape index: {}]   ;;  %s1235_s9 = inlined_call_operand.hbm [shape: f32[1,32], index: 9, kind: input, shape index: {}]   ;;  %s1236_s10 = inlined_call_operand.vmem [shape: bf16[32,32], index: 10, kind: input, shape index: {}]   ;;  %s1237_s11 = inlined_call_operand.vmem [shape: f32[1,32], index: 11, kind: input, shape index: {}]   ;;  %s1238_s12 = inlined_call_operand.hbm [shape: bf16[32,32], index: 12, kind: input, shape index: {}]   ;;  %s1239_s13 = inlined_call_operand.vmem [shape: f32[1,32], index: 13, kind: input, shape index: {}]   ;;  %s1240_s14 = inlined_call_operand.hbm [shape: bf16[32,32], index: 14, kind: input, shape index: {}]   ;;  %s1241_s15 = inlined_call_operand.vmem [shape: f32[1,32], index: 15, kind: input, shape index: {}]   ;;  %s1242_s16 = inlined_call_operand.hbm [shape: bf16[32,128], index: 16, kind: input, shape index: {}]   ;;  %s1243_s17 = inlined_call_operand.vmem [shape: f32[1,128], index: 17, kind: input, shape index: {}]   ;;  %s1244_s18 = inlined_call_operand.vmem [shape: f32[16,128], index: 18, kind: output, shape index: {}]  }
   0x1   :  { %1246 = sst [smem:[#allocation25_spill]] %s1226_s0 }
   0x2   :  { %1247 = sst [smem:[#allocation26_spill]] %s1227_s1 }
   0x3   :  { %1248 = sst [smem:[#allocation27_spill]] %s1228_s2 }
   0x4   :  { %23 = vsyncpa [#allocation3], 0 }
   0x5   :  { %24 = vsyncpa [#allocation5], 0 }
   0x6   :  { %25 = vsyncpa [#allocation8], 0 }
   0x7   :  { %26 = vsyncpa [#allocation11], 0 }
   0x8   :  { %27 = vsyncpa [#allocation14], 0  ;;  %s1249_s29 = sld [smem:[#allocation27_spill]] }
   0xe   :  { %s49_s30 = sshll.u32 %s1249_s29, 4  ;;  %s50_s30 = int_to_ptr.hbm [resolvable:$true] %s49_s30 }
   0xf   :  { %28 = vsyncpa [#allocation17], 0  ;;  %s1012_s0 = smov [#allocation4]   ;;  %s71_s21 = sshll.u32 %s1230_s4, 4  ;;  %s72_s21 = int_to_ptr.hbm [resolvable:$true] %s71_s21 }
  0x10   :  { %s51_s19 = sshll.u32 %s1012_s0, 4  ;;  %s1013_s22 = smov [#allocation7]   ;;  %s52_s19 = int_to_ptr.vmem [resolvable:$true] %s51_s19 }
  0x11   :  { %54 = dma.hbm_to_vmem [thread:$0]  %s50_s30, 64, %s52_s19, [#allocation5]  }
  0x12   :  { %s73_s2 = sshll.u32 %s1013_s22, 4  ;;  %s95_s25 = sshll.u32 %s1233_s7, 4  ;;  %s74_s2 = int_to_ptr.vmem [resolvable:$true] %s73_s2  ;;  %s96_s25 = int_to_ptr.hbm [resolvable:$true] %s95_s25 }
  0x13   :  { %76 = dma.hbm_to_vmem [thread:$0]  %s72_s21, 64, %s74_s2, [#allocation8]  }
  0x14   :  { %s119_s28 = sshll.u32 %s1235_s9, 4  ;;  %s1014_s29 = smov [#allocation10]   ;;  %s120_s28 = int_to_ptr.hbm [resolvable:$true] %s119_s28 }
  0x15   :  { %s97_s0 = sshll.u32 %s1014_s29, 4  ;;  %s1015_s4 = smov [#allocation13]   ;;  %s98_s0 = int_to_ptr.vmem [resolvable:$true] %s97_s0 }
  0x16   :  { %100 = dma.hbm_to_vmem [thread:$0]  %s96_s25, 16, %s98_s0, [#allocation11]  }
  0x17   :  { %s121_s30 = sshll.u32 %s1015_s4, 4  ;;  %s148_s7 = sshll.u32 %s1240_s14, 4  ;;  %s122_s30 = int_to_ptr.vmem [resolvable:$true] %s121_s30  ;;  %s149_s7 = int_to_ptr.hbm [resolvable:$true] %s148_s7 }
  0x18   :  { %124 = dma.hbm_to_vmem [thread:$0]  %s120_s28, 16, %s122_s30, [#allocation14]  }
  0x19   :  { %s1016_s20 = smov [#allocation16]   ;;  %s1250_s9 = sld [smem:[#allocation26_spill]] }
  0x1a   :  { %s150_s21 = sshll.u32 %s1016_s20, 4  ;;  %s1017_s24 = smov 64   ;;  %s151_s21 = int_to_ptr.vmem [resolvable:$true] %s150_s21 }
  0x1b   :  { %s1018_s26 = smov 4   ;;  %s1019_s25 = smov [#allocation2]  }
  0x1c   :  { %156 = dma.hbm_to_vmem [thread:$0]  %s149_s7, 256, %s151_s21, [#allocation17], %s1017_s24, %s1017_s24, %s1018_s26  }
  0x1d   :  { %s37_s27 = sshll.u32 %s1019_s25, 4  ;;  %s60_s14 = sshll.u32 %s1229_s3, 4  ;;  %s38_s27 = int_to_ptr.vmem [resolvable:$true] %s37_s27  ;;  %s61_s14 = int_to_ptr.hbm [resolvable:$true] %s60_s14 }
  0x1e   :  { %s82_s30 = sshll.u32 %s1231_s5, 4  ;;  %s1020_s19 = smov [#allocation6]   ;;  %s83_s30 = int_to_ptr.hbm [resolvable:$true] %s82_s30 }
  0x1f   :  { %s35_s23 = sshll.u32 %s1250_s9, 4  ;;  %s62_s1 = sshll.u32 %s1020_s19, 4  ;;  %s36_s23 = int_to_ptr.hbm [resolvable:$true] %s35_s23  ;;  %s63_s1 = int_to_ptr.vmem [resolvable:$true] %s62_s1 }
  0x20   :  { %43 = dma.hbm_to_vmem [thread:$0]  %s36_s23, 128, %s38_s27, [#allocation3], %s1017_s24, %s1017_s24, %s1018_s26  }
  0x21   :  { %65 = dma.hbm_to_vmem [thread:$0]  %s61_s14, 16, %s63_s1, [#allocation5]  }
  0x22   :  { %s1021_s7 = smov [#allocation9]   ;;  %s105_s3 = sshll.u32 %s1234_s8, 4  ;;  %s106_s3 = int_to_ptr.hbm [resolvable:$true] %s105_s3 }
  0x23   :  { %s84_s20 = sshll.u32 %s1021_s7, 4  ;;  %s133_s23 = sshll.u32 %s1238_s12, 4  ;;  %s85_s20 = int_to_ptr.vmem [resolvable:$true] %s84_s20  ;;  %s134_s23 = int_to_ptr.hbm [resolvable:$true] %s133_s23 }
  0x24   :  { %87 = dma.hbm_to_vmem [thread:$0]  %s83_s30, 16, %s85_s20, [#allocation8]  }
  0x25   :  { %s1022_s25 = smov [#allocation12]   ;;  %s1023_s27 = smov [#allocation15]  }
  0x26   :  { %s107_s5 = sshll.u32 %s1022_s25, 4  ;;  %s135_s28 = sshll.u32 %s1023_s27, 4  ;;  %s108_s5 = int_to_ptr.vmem [resolvable:$true] %s107_s5  ;;  %s136_s28 = int_to_ptr.vmem [resolvable:$true] %s135_s28 }
  0x27   :  { %113 = dma.hbm_to_vmem [thread:$0]  %s106_s3, 256, %s108_s5, [#allocation11], %s1017_s24, %s1017_s24, %s1018_s26  }
  0x28   :  { %s163_s8 = sshll.u32 %s1242_s16, 4  ;;  %s1024_s12 = smov [#allocation18]   ;;  %s164_s8 = int_to_ptr.hbm [resolvable:$true] %s163_s8 }
  0x29   :  { %141 = dma.hbm_to_vmem [thread:$0]  %s134_s23, 256, %s136_s28, [#allocation14], %s1017_s24, %s1017_s24, %s1018_s26  }
  0x2a   :  { %s165_s0 = sshll.u32 %s1024_s12, 4  ;;  %s166_s0 = int_to_ptr.vmem [resolvable:$true] %s165_s0 }
  0x2b   :  { %171 = dma.hbm_to_vmem [thread:$0]  %s164_s8, 256, %s166_s0, [#allocation17], %s1017_s24, %s1017_s24, %s1018_s26  }
  0x2c   :  { %1000 = dma.done.wait [#allocation3], 128  }
  0x2d   :  { %1001 = vsyncadd [#allocation3], 4294967168 }
  0x2e   :  { %1002 = dma.done.wait [#allocation5], 80  }
  0x2f   :  { %1003 = vsyncadd [#allocation5], 4294967216 }
  0x30   :  { %1004 = dma.done.wait [#allocation8], 80  }
  0x31   :  { %1005 = vsyncadd [#allocation8], 4294967216 }
  0x32   :  { %1006 = dma.done.wait [#allocation11], 272  }
  0x33   :  { %1007 = vsyncadd [#allocation11], 4294967024 }
  0x34   :  { %1008 = dma.done.wait [#allocation14], 272  }
  0x35   :  { %1009 = vsyncadd [#allocation14], 4294967024 }
  0x36   :  { %1010 = dma.done.wait [#allocation17], 512  }
  0x37   :  { %1011 = vsyncadd [#allocation17], 4294966784  ;;  %vm240_vm0 = vcmask 1043456   ;;  %v223_v0 = vld [vmem:[#allocation4] sm:$0xf]  ;;  %s1251_s30 = sld [smem:[#allocation25_spill]] }
  0x38   :  { %v242_v3 = vsel %vm240_vm0, %v223_v0, 0  ;;  %vm236_vm1 = vcmask 64512   ;;  %v225_v5 = vld [vmem:[#allocation7] sm:$0xf]  ;;  %v712_v8 = vld [vmem:[#allocation6] ss:$0 sm:$0xff] }
  0x39   :  { %251 = vmatpush.bf16.msra.mxu0 %v242_v3  ;;  %v269_v6 = vsel %vm240_vm0, %v225_v5, 0  ;;  %v1176_v20 = vld [vmem:[#allocation2] sm:$0xff]  ;;  %vm294_vm4 = vcmask 130048   ;;  %v688_v21 = vld [vmem:[%s1232_s6 + $0x8] sm:$0xff]  ;;  %v713_v24 = vld [vmem:[#allocation9] ss:$0 sm:$0xff] }
  0x3a   :  { %278 = vmatpush.bf16.msra.mxu1 %v269_v6  ;;  %338 = vmatpush.bf16.msra.mxu3 %v688_v21  ;;  %v687_v22 = vld [vmem:[%s1232_s6] sm:$0xff]  ;;  %vm328_vm5 = vcmask 261120   ;;  %v689_v30 = vld [vmem:[#allocation12] sm:$0xff]  ;;  %v714_v32 = vld [vmem:[#allocation10] ss:$0 sm:$0xff] }
  0x3b   :  { %v690_v29 = vld [vmem:[#allocation12 + $0x8] sm:$0xff]  ;;  %v692_v39 = vld [vmem:[%s1236_s10 + $0x8] sm:$0xff]  ;;  %v715_v42 = vld [vmem:[#allocation13] ss:$0 sm:$0xff] }
  0x3c   :  { %v691_v40 = vld [vmem:[%s1236_s10] sm:$0xff]  ;;  %v694_v54 = vld [vmem:[#allocation15 + $0x8] sm:$0xff]  ;;  %v693_v55 = vld [vmem:[#allocation15] sm:$0xff] }
  0x3d   :  { %v221_v1 = vld [vmem:[%s1251_s30] sm:$0xff]  ;;  %v222_v2 = vld [vmem:[%s1251_s30 + $0x8] sm:$0xff]  ;;  %388 = vmatpush.bf16.msrb.mxu0 %v690_v29  ;;  %v695_v63 = vld [vmem:[#allocation16] sm:$0xff] }
  0x3e   :  { %v232_v4 = vpack.c.bf16 %v222_v2, %v221_v1  ;;  %339 = vmatpush.bf16.msra.mxu3 %v687_v22  ;;  %424 = vmatpush.bf16.msrb.mxu1 %v692_v39  ;;  %v716_v57 = vld [vmem:[%s1237_s11] ss:$0 sm:$0xff] }
  0x3f   :  { %v696_v62 = vld [vmem:[#allocation16 + $0x8] sm:$0xff] }
  0x40   :  { %623 = vmatmul.msk.bf16.vlgmr.msra.gmra.mxu0 %vm236_vm1, %v232_v4  ;;  %v717_v1 = vld [vmem:[%s1239_s13] ss:$0 sm:$0xff] }
  0x41   :  { %389 = vmatpush.bf16.msrb.mxu0 %v689_v30 }
  0x42   :  { %425 = vmatpush.bf16.msrb.mxu1 %v691_v40  ;;  %475 = vmatpush.bf16.msrb.mxu3 %v694_v54 }
  0x45   :  { %520 = vmatpush.bf16.msra.mxu0 %v696_v62 }
  0x46   :  { %476 = vmatpush.bf16.msrb.mxu3 %v693_v55 }
  0x49   :  { %521 = vmatpush.bf16.msra.mxu0 %v695_v63 }
  0xbd   :  { %v253_v7 = vpop.f32.mrf.mxu0 }
  0xbe   :  { %v254_v9 = vadd.f32 %v712_v8, %v253_v7 }
  0xc0   :  { %v260_v11 = vmul.f32 0.01, %v254_v9  ;;  %vm258_vm2 = vcmp.ge.f32.partialorder %v254_v9, 0.0 }
  0xc2   :  { %v262_v14 = vsel %vm258_vm2, %v254_v9, %v260_v11  ;;  %v697_v9 = vld [vmem:[#allocation18] sm:$0xff]  ;;  %v718_v11 = vld [vmem:[%s1241_s15] ss:$0 sm:$0xff] }
  0xc5   :  { %v255_v10 = vpop.f32.mrf.mxu0 }
  0xc6   :  { %v256_v12 = vadd.f32 %v712_v8, %v255_v10  ;;  %v698_v8 = vld [vmem:[#allocation18 + $0x8] sm:$0xff] }
  0xc8   :  { %vm259_vm3 = vcmp.ge.f32.partialorder %v256_v12, 0.0  ;;  %v261_v13 = vmul.f32 0.01, %v256_v12 }
  0xca   :  { %v263_v15 = vsel %vm259_vm3, %v256_v12, %v261_v13 }
  0xcb   :  { %v264_v16 = vpack.c.bf16 %v263_v15, %v262_v14 }
  0xcd   :  { %624 = vmatmul.msk.bf16.vlgmr.msra.gmra.mxu1 %vm236_vm1, %v264_v16 }
  0xce   :  { %556 = vmatpush.bf16.msra.mxu1 %v698_v8 }
  0xd2   :  { %557 = vmatpush.bf16.msra.mxu1 %v697_v9 }
 0x14a   :  { %v280_v17 = vpop.f32.mrf.mxu1 }
 0x152   :  { %v282_v18 = vpop.f32.mrf.mxu1 }
 0x153   :  { %v285_v19 = vpack.c.bf16 %v282_v18, %v280_v17 }
 0x155   :  { %305 = vmatpush.bf16.msra.mxu2 %v285_v19 }
 0x158   :  { %629 = vmatmul.msk.bf16.vlgmr.msra.gmra.mxu2 %vm294_vm4, %v1176_v20 }
 0x1db   :  { %v307_v23 = vpop.f32.mrf.mxu2 }
 0x1dc   :  { %v308_v26 = vadd.f32 %v713_v24, %v307_v23 }
 0x1e3   :  { %v309_v25 = vpop.f32.mrf.mxu2 }
 0x1e4   :  { %v310_v27 = vadd.f32 %v713_v24, %v309_v25  ;;  %v582_v24 = vlaneseq }
 0x1e6   :  { %v312_v28 = vpack.c.bf16 %v310_v27, %v308_v26  ;;  %v583_v25 = vand.u32 127, %v582_v24  ;;  %v719_v26 = vld [vmem:[%s1243_s17] ss:$0 sm:$0xff] }
 0x1e8   :  { %638 = vmatmul.msk.bf16.vlgmr.msra.gmra.mxu3 %vm328_vm5, %v312_v28  ;;  %vm584_vm10 = vcmp.lt.s32.totalorder %v583_v25, 4 }
 0x26b   :  { %v341_v31 = vpop.f32.mrf.mxu3 }
 0x26c   :  { %v342_v33 = vadd.f32 %v714_v32, %v341_v31 }
 0x26e   :  { %720 = vtanh.f32 %v342_v33 }
 0x273   :  { %v343_v34 = vpop.f32.mrf.mxu3 }
 0x274   :  { %v344_v35 = vadd.f32 %v714_v32, %v343_v34  ;;  %v721_v36 = vpop.eup %720 }
 0x276   :  { %722 = vtanh.f32 %v344_v35 }
 0x27c   :  { %v723_v37 = vpop.eup %722 }
 0x27d   :  { %v363_v38 = vpack.c.bf16 %v723_v37, %v721_v36 }
 0x27f   :  { %647 = vmatmul.msk.bf16.vlgmr.msrb.gmra.mxu0 %vm328_vm5, %v363_v38 }
 0x2fc   :  { %v391_v41 = vpop.f32.mrf.mxu0 }
 0x2fd   :  { %v392_v43 = vadd.f32 %v715_v42, %v391_v41 }
 0x2ff   :  { %v398_v45 = vmul.f32 0.01, %v392_v43  ;;  %vm396_vm6 = vcmp.ge.f32.partialorder %v392_v43, 0.0 }
 0x301   :  { %v400_v48 = vsel %vm396_vm6, %v392_v43, %v398_v45 }
 0x304   :  { %v393_v44 = vpop.f32.mrf.mxu0 }
 0x305   :  { %v394_v46 = vadd.f32 %v715_v42, %v393_v44 }
 0x307   :  { %vm397_vm7 = vcmp.ge.f32.partialorder %v394_v46, 0.0  ;;  %v399_v47 = vmul.f32 0.01, %v394_v46 }
 0x309   :  { %v401_v49 = vsel %vm397_vm7, %v394_v46, %v399_v47 }
 0x30a   :  { %v402_v50 = vpack.c.bf16 %v401_v49, %v400_v48 }
 0x30c   :  { %656 = vmatmul.msk.bf16.vlgmr.msrb.gmra.mxu1 %vm328_vm5, %v402_v50 }
 0x389   :  { %v427_v51 = vpop.f32.mrf.mxu1 }
 0x391   :  { %v429_v52 = vpop.f32.mrf.mxu1 }
 0x392   :  { %v432_v53 = vpack.c.bf16 %v429_v52, %v427_v51 }
 0x394   :  { %443 = vmatpush.bf16.msrb.mxu2 %v432_v53 }
 0x397   :  { %657 = vmatmul.msk.bf16.vlgmr.msrb.gmra.mxu2 %vm294_vm4, %v1176_v20 }
 0x41a   :  { %v445_v56 = vpop.f32.mrf.mxu2 }
 0x41b   :  { %v446_v59 = vadd.f32 %v716_v57, %v445_v56 }
 0x422   :  { %v447_v58 = vpop.f32.mrf.mxu2 }
 0x423   :  { %v448_v60 = vadd.f32 %v716_v57, %v447_v58 }
 0x425   :  { %v450_v61 = vpack.c.bf16 %v448_v60, %v446_v59 }
 0x427   :  { %666 = vmatmul.msk.bf16.vlgmr.msrb.gmra.mxu3 %vm328_vm5, %v450_v61 }
 0x4aa   :  { %v478_v0 = vpop.f32.mrf.mxu3 }
 0x4ab   :  { %v479_v2 = vadd.f32 %v717_v1, %v478_v0 }
 0x4ad   :  { %724 = vtanh.f32 %v479_v2 }
 0x4b2   :  { %v480_v3 = vpop.f32.mrf.mxu3 }
 0x4b3   :  { %v481_v4 = vadd.f32 %v717_v1, %v480_v3  ;;  %v725_v5 = vpop.eup %724 }
 0x4b5   :  { %726 = vtanh.f32 %v481_v4 }
 0x4bb   :  { %v727_v6 = vpop.eup %726 }
 0x4bc   :  { %v495_v7 = vpack.c.bf16 %v727_v6, %v725_v5 }
 0x4be   :  { %675 = vmatmul.msk.bf16.vlgmr.msra.gmra.mxu0 %vm328_vm5, %v495_v7 }
 0x53b   :  { %v523_v10 = vpop.f32.mrf.mxu0 }
 0x53c   :  { %v524_v12 = vadd.f32 %v718_v11, %v523_v10 }
 0x53e   :  { %v530_v14 = vmul.f32 0.01, %v524_v12  ;;  %vm528_vm8 = vcmp.ge.f32.partialorder %v524_v12, 0.0 }
 0x540   :  { %v532_v17 = vsel %vm528_vm8, %v524_v12, %v530_v14 }
 0x543   :  { %v525_v13 = vpop.f32.mrf.mxu0 }
 0x544   :  { %v526_v15 = vadd.f32 %v718_v11, %v525_v13 }
 0x546   :  { %vm529_vm9 = vcmp.ge.f32.partialorder %v526_v15, 0.0  ;;  %v531_v16 = vmul.f32 0.01, %v526_v15 }
 0x548   :  { %v533_v18 = vsel %vm529_vm9, %v526_v15, %v531_v16 }
 0x549   :  { %v534_v19 = vpack.c.bf16 %v533_v18, %v532_v17 }
 0x54b   :  { %684 = vmatmul.msk.bf16.vlgmr.msra.gmra.mxu1 %vm328_vm5, %v534_v19 }
 0x5c8   :  { %v559_v21 = vpop.f32.mrf.mxu1 }
 0x5d0   :  { %v561_v22 = vpop.f32.mrf.mxu1 }
 0x5d1   :  { %v564_v23 = vpack.c.bf16 %v561_v22, %v559_v21 }
 0x5d3   :  { %575 = vmatpush.bf16.msra.mxu2 %v564_v23 }
 0x5d6   :  { %685 = vmatmul.msk.bf16.vlgmr.msra.gmra.mxu2 %vm294_vm4, %v1176_v20 }
 0x659   :  { %v577_v27 = vpop.f32.mrf.mxu2 }
 0x65a   :  { %v578_v28 = vadd.f32 %v719_v26, %v577_v27 }
 0x65c   :  { %v585_v29 = vsel %vm584_vm10, %v578_v28, -1e+30 }
 0x65d   :  { %587 = vmax.xlane.f32.xlu0 %v585_v29 }
 0x661   :  { %v579_v30 = vpop.f32.mrf.mxu2 }
 0x662   :  { %v580_v31 = vadd.f32 %v719_v26, %v579_v30 }
 0x664   :  { %v586_v32 = vsel %vm584_vm10, %v580_v31, -1e+30 }
 0x665   :  { %589 = vmax.xlane.f32.xlu0 %v586_v32 }
 0x6d0   :  { %v588_v33 = vpop.xlane.xlu0 %587 }
 0x6d1   :  { %v591_v34 = vsub.f32 %v585_v29, %v588_v33 }
 0x6d3   :  { %v593_v20 = vmul.f32 1.442695, %v591_v34 }
 0x6d5   :  { %728 = vpow2.f32 %v593_v20 }
 0x6d8   :  { %v590_v35 = vpop.xlane.xlu0 %589 }
 0x6d9   :  { %v592_v36 = vsub.f32 %v586_v32, %v590_v35 }
 0x6db   :  { %v729_v37 = vpop.eup %728  ;;  %v595_v38 = vmul.f32 1.442695, %v592_v36 }
 0x6dc   :  { %v597_v39 = vsel %vm584_vm10, %v729_v37, 0.0 }
 0x6dd   :  { %730 = vpow2.f32 %v595_v38  ;;  %599 = vadd.xlane.f32.xlu1 %v597_v39 }
 0x6e3   :  { %v731_v40 = vpop.eup %730 }
 0x6e4   :  { %v598_v41 = vsel %vm584_vm10, %v731_v40, 0.0 }
 0x6e5   :  { %601 = vadd.xlane.f32.xlu1 %v598_v41 }
 0x750   :  { %v600_v42 = vpop.xlane.xlu1 %599 }
 0x751   :  { %732 = vlog2.f32 %v600_v42 }
 0x757   :  { %v733_v43 = vpop.eup %732 }
 0x758   :  { %v604_v44 = vmul.f32 0.6931472, %v733_v43  ;;  %v602_v45 = vpop.xlane.xlu1 %601 }
 0x759   :  { %734 = vlog2.f32 %v602_v45 }
 0x75a   :  { %v607_v46 = vsub.f32 %v591_v34, %v604_v44 }
 0x75c   :  { %v609_v47 = vsel %vm584_vm10, %v607_v46, 0.0 }
 0x75d   :  { %611 = vst [vmem:[%s1244_s18] sm:$0xff] %v609_v47 }
 0x75f   :  { %v735_v48 = vpop.eup %734 }
 0x760   :  { %v606_v49 = vmul.f32 0.6931472, %v735_v48 }
 0x762   :  { %v608_v50 = vsub.f32 %v592_v36, %v606_v49 }
 0x764   :  { %v610_v51 = vsel %vm584_vm10, %v608_v50, 0.0 }
 0x765   :  { %612 = vst [vmem:[%s1244_s18 + $0x8] sm:$0xff] %v610_v51 }
 0x766   :  { %617 = vsyncpa [#allocation3], 1 }
 0x767   :  { %618 = vsyncpa [#allocation5], 1 }
 0x768   :  { %619 = vsyncpa [#allocation8], 1 }
 0x769   :  { %620 = vsyncpa [#allocation11], 1 }
 0x76a   :  { %621 = vsyncpa [#allocation14], 1 }
 0x76b   :  { %622 = vsyncpa [#allocation17], 1 }

</bundles_post_ra>
